<compile_context>
chip_gen: v5e
topology: v5e:2x2
jax: 0.10.0
libtpu: 0.0.40
codegen_flags: <defaults>
</compile_context>

<pallas_src>
import functools

import jax
import jax.numpy as jnp
from jax.experimental import pallas as pl
from jax.experimental.pallas import tpu as pltpu


def _gru_ln_rollout_kernel(*refs, num_layers, hidden, t_block, t_total,
                           matmul_dtype):
    """One grid step = TB GRU time steps over all layers + LayerNorm of the top output.

    Ref order:
      x(TB,N,Din)  mask(TB,N,1)  h0(L,N,H)
      per layer l: w_i (Din_l,3H)  w_h (H,3H)  b_i (1,3H)  b_hn (1,H)
      gamma(1,H) beta(1,H)
      out_y(TB,N,H) out_h(L,N,H)           [outputs]
      h_sc(L,N,H) float32                  [scratch: hidden-state carry]
    """
    L, H, TB, T = num_layers, hidden, t_block, t_total
    x_ref, m_ref, h0_ref = refs[0], refs[1], refs[2]
    wp = refs[3:3 + 4 * L]
    gamma_ref, beta_ref = refs[3 + 4 * L], refs[4 + 4 * L]
    out_y_ref, out_h_ref, h_sc = refs[5 + 4 * L], refs[6 + 4 * L], refs[7 + 4 * L]

    t = pl.program_id(0)

    @pl.when(t == 0)
    def _():
        h_sc[...] = h0_ref[...].astype(jnp.float32)

    n_rows = x_ref.shape[1]
    rem = T % TB          # static; only tail steps of the last chunk can be padding

    gamma = gamma_ref[...]
    beta = beta_ref[...]

    for tt in range(TB):  # unrolled — TB is small and static
        x_t = x_ref[tt].astype(jnp.float32)
        # Hoisted mask broadcast: once per step, reused across layers.
        mask_b = jnp.broadcast_to(m_ref[tt].astype(jnp.float32), (n_rows, H))

        layer_in = x_t
        h_new_all = []
        for l in range(L):
            w_i, w_h, b_i, b_hn = wp[4 * l:4 * l + 4]

            # Masked hidden reset: h_{t-1} * mask (exact for binary masks).
            h_prev = h_sc[l] * mask_b

            # Fused (N,Din)@(Din,3H) and (N,H)@(H,3H) matmuls; f32 accumulation.
            gi = jnp.dot(layer_in.astype(matmul_dtype), w_i[...],
                         preferred_element_type=jnp.float32) + b_i[...]
            gh = jnp.dot(h_prev.astype(matmul_dtype), w_h[...],
                         preferred_element_type=jnp.float32)

            r = jax.nn.sigmoid(gi[:, :H] + gh[:, :H])
            z = jax.nn.sigmoid(gi[:, H:2 * H] + gh[:, H:2 * H])
            n = jnp.tanh(gi[:, 2 * H:] + r * (gh[:, 2 * H:] + b_hn[...]))
            h_new = (1.0 - z) * n + z * h_prev

            h_new_all.append(h_new)
            layer_in = h_new

        # LayerNorm over the true feature dim of the top-layer output (eps = 1e-5).
        mu = jnp.mean(layer_in, axis=-1, keepdims=True)
        var = jnp.mean(jnp.square(layer_in - mu), axis=-1, keepdims=True)
        y = (layer_in - mu) * jax.lax.rsqrt(var + 1e-5)
        out_y_ref[tt] = (y * gamma + beta).astype(out_y_ref.dtype)

        def commit():
            for l in range(L):
                h_sc[l] = h_new_all[l]        # carry stays f32 across steps

        if rem != 0 and tt >= rem:
            # This sub-step may be time padding (only in the last chunk): gate the
            # hidden-state commit so padded steps never touch the carry.
            pl.when(t * TB + tt < T)(commit)
        else:
            commit()

    @pl.when(t == pl.num_programs(0) - 1)
    def _():
        out_h_ref[...] = h_sc[...].astype(out_h_ref.dtype)


def gru_ln_rollout(xs, h0, ms, flat_params, gamma, beta, *,
                   matmul_dtype=jnp.bfloat16, t_block=8):
    """xs: (T,N,Din), h0: (L,N,H) layer-major, ms: (T,N,1) -> (y (T,N,H), h (L,N,H))."""
    T, N, Din = xs.shape
    L, _, H = h0.shape

    # Pad batch (sublane) dim to a multiple of 8; padded rows are masked (0) and
    # sliced off below.
    Np = ((N + 7) // 8) * 8
    if Np != N:
        xs = jnp.pad(xs, ((0, 0), (0, Np - N), (0, 0)))
        ms = jnp.pad(ms, ((0, 0), (0, Np - N), (0, 0)))
        h0 = jnp.pad(h0, ((0, 0), (0, Np - N), (0, 0)))

    # Chunk the time axis to amortize per-grid-step overhead and enlarge DMAs.
    TB = max(1, min(t_block, T))
    n_chunks = pl.cdiv(T, TB)
    Tp = n_chunks * TB
    if Tp != T:
        xs = jnp.pad(xs, ((0, Tp - T), (0, 0), (0, 0)))
        ms = jnp.pad(ms, ((0, Tp - T), (0, 0), (0, 0)))

    const3 = lambda t: (0, 0, 0)
    const2 = lambda t: (0, 0)

    in_specs = [
        pl.BlockSpec((TB, Np, Din), lambda t: (t, 0, 0)),   # x chunk
        pl.BlockSpec((TB, Np, 1), lambda t: (t, 0, 0)),     # mask chunk
        pl.BlockSpec((L, Np, H), const3),                   # h0 (VMEM-resident)
    ]
    for p in flat_params:                                   # weights/biases stay resident
        in_specs.append(pl.BlockSpec(p.shape, const2))
    in_specs += [pl.BlockSpec((1, H), const2),              # gamma
                 pl.BlockSpec((1, H), const2)]              # beta

    out_specs = (pl.BlockSpec((TB, Np, H), lambda t: (t, 0, 0)),
                 pl.BlockSpec((L, Np, H), const3))

    y, h = pl.pallas_call(
        functools.partial(_gru_ln_rollout_kernel, num_layers=L, hidden=H,
                          t_block=TB, t_total=T, matmul_dtype=matmul_dtype),
        grid=(n_chunks,),
        in_specs=in_specs,
        out_specs=out_specs,
        out_shape=(jax.ShapeDtypeStruct((Tp, Np, H), xs.dtype),
                   jax.ShapeDtypeStruct((L, Np, H), h0.dtype)),
        scratch_shapes=[pltpu.VMEM((L, Np, H), jnp.float32)],
        compiler_params=pltpu.CompilerParams(
            dimension_semantics=("arbitrary",)),
    )(xs, ms, h0, *flat_params, gamma, beta)

    return y[:T, :N, :], h[:, :N, :]


class RNNLayerPallas:
    """JAX/Pallas re-implementation of RNNLayer (GRU(num_layers=recurrent_N) + LayerNorm)."""

    def __init__(self, inputs_dim, outputs_dim, recurrent_N, use_orthogonal=True,
                 key=jax.random.PRNGKey(0), matmul_dtype=jnp.bfloat16):
        self.inputs_dim = inputs_dim
        self.outputs_dim = outputs_dim
        self.recurrent_N = recurrent_N
        self.matmul_dtype = matmul_dtype
        H = outputs_dim
        init = (jax.nn.initializers.orthogonal() if use_orthogonal
                else jax.nn.initializers.glorot_uniform())
        flat = []
        for l in range(recurrent_N):
            d_in = inputs_dim if l == 0 else H
            key, k1, k2 = jax.random.split(key, 3)
            # PyTorch layout: weight_ih_l{l} (3H, d_in), weight_hh_l{l} (3H, H),
            # gate order (r | z | n); biases constant-initialized to 0.
            w_ih = init(k1, (3 * H, d_in), jnp.float32)
            w_hh = init(k2, (3 * H, H), jnp.float32)
            b_ih = jnp.zeros((3 * H,), jnp.float32)
            b_hh = jnp.zeros((3 * H,), jnp.float32)
            # Fuse gates, pre-transpose once and pre-cast to the MXU operand dtype:
            # one (d_in, 3H) and one (H, 3H) matmul per layer, no in-kernel casts.
            w_i = w_ih.T.astype(matmul_dtype)                     # (d_in, 3H)
            w_h = w_hh.T.astype(matmul_dtype)                     # (H, 3H)
            # Fold b_hr / b_hz into the input-path bias; keep b_hn separate for the
            # n gate (it sits inside r * (W_hn h + b_hn)). Biases stay f32.
            b_i = (b_ih + jnp.concatenate(
                [b_hh[:2 * H], jnp.zeros((H,), jnp.float32)])).reshape(1, 3 * H)
            b_hn = b_hh[2 * H:].reshape(1, H)
            flat += [w_i, w_h, b_i, b_hn]
        self.flat_params = flat
        self.gamma = jnp.ones((1, H), jnp.float32)   # LayerNorm weight
        self.beta = jnp.zeros((1, H), jnp.float32)   # LayerNorm bias

    def __call__(self, x, hxs, masks):
        N = hxs.shape[0]
        H = self.outputs_dim
        h0 = jnp.transpose(hxs, (1, 0, 2))  # (L, N, H), nn.GRU convention
        single = (x.shape[0] == N)
        T = 1 if single else x.shape[0] // N
        xs = x.reshape(T, N, x.shape[-1])
        ms = masks.reshape(T, N, 1)
        # TODO(synk): multiplying h by masks[t] every step matches PyTorch's
        # data-dependent segment splitting only for strictly binary masks.
        y, h = gru_ln_rollout(xs, h0, ms, self.flat_params, self.gamma, self.beta,
                              matmul_dtype=self.matmul_dtype)
        h_out = jnp.transpose(h, (1, 0, 2))  # back to (N, L, H)
        if single:
            return y[0], h_out
        return y.reshape(T * N, H), h_out


if __name__ == "__main__":
    inputs_dim, outputs_dim, recurrent_N = 24, 32, 2
    N, T = 4, 3

    root = jax.random.PRNGKey(0)
    k_model, kx, kh, km, kx2, km2 = jax.random.split(root, 6)

    model = RNNLayerPallas(inputs_dim, outputs_dim, recurrent_N,
                           use_orthogonal=True, key=k_model)

    # Branch 1: x.shape[0] == hxs.shape[0] (single step -> one chunk, grid=(1,))
    x = jax.random.normal(kx, (N, inputs_dim), jnp.float32)
    hxs = jax.random.normal(kh, (N, recurrent_N, outputs_dim), jnp.float32)
    masks = (jax.random.uniform(km, (N, 1)) > 0.3).astype(jnp.float32)

    y, h_out = model(x, hxs, masks)
    jax.block_until_ready((y, h_out))
    assert y.shape == (N, outputs_dim)
    assert h_out.shape == (N, recurrent_N, outputs_dim)
    assert bool(jnp.all(jnp.isfinite(y))) and bool(jnp.all(jnp.isfinite(h_out)))

    # Branch 2: rollout path, x has T*N rows -> ONE fused time-chunked kernel call
    x2 = jax.random.normal(kx2, (T * N, inputs_dim), jnp.float32)
    masks2 = (jax.random.uniform(km2, (T * N, 1)) > 0.3).astype(jnp.float32)

    y2, h_out2 = model(x2, hxs, masks2)
    jax.block_until_ready((y2, h_out2))
    assert y2.shape == (T * N, outputs_dim)
    assert h_out2.shape == (N, recurrent_N, outputs_dim)
    assert bool(jnp.all(jnp.isfinite(y2))) and bool(jnp.all(jnp.isfinite(h_out2)))

    print("KERNEL_OK")
</pallas_src>

<mosaic_0001>
module attributes {stable_mosaic.version = 11 : i64} {
  func.func @_gru_ln_rollout_kernel(%arg0: i32, %arg1: memref<1x8x24xf32, #tpu.memory_space<vmem>>, %arg2: memref<1x8x1xf32, #tpu.memory_space<vmem>>, %arg3: memref<2x8x32xf32, #tpu.memory_space<vmem>>, %arg4: memref<24x96xbf16, #tpu.memory_space<vmem>>, %arg5: memref<32x96xbf16, #tpu.memory_space<vmem>>, %arg6: memref<1x96xf32, #tpu.memory_space<vmem>>, %arg7: memref<1x32xf32, #tpu.memory_space<vmem>>, %arg8: memref<32x96xbf16, #tpu.memory_space<vmem>>, %arg9: memref<32x96xbf16, #tpu.memory_space<vmem>>, %arg10: memref<1x96xf32, #tpu.memory_space<vmem>>, %arg11: memref<1x32xf32, #tpu.memory_space<vmem>>, %arg12: memref<1x32xf32, #tpu.memory_space<vmem>>, %arg13: memref<1x32xf32, #tpu.memory_space<vmem>>, %arg14: memref<1x8x32xf32, #tpu.memory_space<vmem>>, %arg15: memref<2x8x32xf32, #tpu.memory_space<vmem>>, %arg16: memref<2x8x32xf32, #tpu.memory_space<vmem>>) attributes {dimension_semantics = [#tpu.dimension_semantics<arbitrary>], iteration_bounds = array<i64: 1>, scalar_prefetch = 0 : i64, scratch_operands = 1 : i64, tpu.core_type = #tpu.core_type<tc>, window_params = [{transform_indices = @transform_0, window_bounds = array<i64: 1, 8, 24>}, {transform_indices = @transform_1, window_bounds = array<i64: 1, 8, 1>}, {pipeline_mode = #tpu.pipeline_mode<synchronous>, transform_indices = @transform_2, window_bounds = array<i64: 2, 8, 32>}, {pipeline_mode = #tpu.pipeline_mode<synchronous>, transform_indices = @transform_3, window_bounds = array<i64: 24, 96>}, {pipeline_mode = #tpu.pipeline_mode<synchronous>, transform_indices = @transform_4, window_bounds = array<i64: 32, 96>}, {pipeline_mode = #tpu.pipeline_mode<synchronous>, transform_indices = @transform_5, window_bounds = array<i64: 1, 96>}, {pipeline_mode = #tpu.pipeline_mode<synchronous>, transform_indices = @transform_6, window_bounds = array<i64: 1, 32>}, {pipeline_mode = #tpu.pipeline_mode<synchronous>, transform_indices = @transform_7, window_bounds = array<i64: 32, 96>}, {pipeline_mode = #tpu.pipeline_mode<synchronous>, transform_indices = @transform_8, window_bounds = array<i64: 32, 96>}, {pipeline_mode = #tpu.pipeline_mode<synchronous>, transform_indices = @transform_9, window_bounds = array<i64: 1, 96>}, {pipeline_mode = #tpu.pipeline_mode<synchronous>, transform_indices = @transform_10, window_bounds = array<i64: 1, 32>}, {pipeline_mode = #tpu.pipeline_mode<synchronous>, transform_indices = @transform_11, window_bounds = array<i64: 1, 32>}, {pipeline_mode = #tpu.pipeline_mode<synchronous>, transform_indices = @transform_12, window_bounds = array<i64: 1, 32>}, {transform_indices = @transform_13, window_bounds = array<i64: 1, 8, 32>}, {pipeline_mode = #tpu.pipeline_mode<synchronous>, transform_indices = @transform_14, window_bounds = array<i64: 2, 8, 32>}]} {
    %c0_i32 = arith.constant 0 : i32
    %0 = arith.cmpi eq, %arg0, %c0_i32 : i32
    %1 = arith.extui %0 : i1 to i32
    %c0_i32_0 = arith.constant 0 : i32
    %2 = arith.cmpi ne, %1, %c0_i32_0 : i32
    scf.if %2 {
      %c0_56 = arith.constant 0 : index
      %c0_57 = arith.constant 0 : index
      %c0_58 = arith.constant 0 : index
      %127 = vector.load %arg3[%c0_56, %c0_57, %c0_58] : memref<2x8x32xf32, #tpu.memory_space<vmem>>, vector<2x8x32xf32>
      %c0_59 = arith.constant 0 : index
      %c0_60 = arith.constant 0 : index
      %c0_61 = arith.constant 0 : index
      %128 = vector.load %arg16[%c0_59, %c0_60, %c0_61] : memref<2x8x32xf32, #tpu.memory_space<vmem>>, vector<2x8x32xf32>
      tpu.vector_store %arg16[%c0_59, %c0_60, %c0_61], %127 {strides = array<i32>} : memref<2x8x32xf32, #tpu.memory_space<vmem>>, vector<2x8x32xf32>,
    } else {
    }
    %c0 = arith.constant 0 : index
    %c0_1 = arith.constant 0 : index
    %3 = vector.load %arg12[%c0, %c0_1] : memref<1x32xf32, #tpu.memory_space<vmem>>, vector<1x32xf32>
    %c0_2 = arith.constant 0 : index
    %c0_3 = arith.constant 0 : index
    %4 = vector.load %arg13[%c0_2, %c0_3] : memref<1x32xf32, #tpu.memory_space<vmem>>, vector<1x32xf32>
    %c0_4 = arith.constant 0 : index
    %c0_5 = arith.constant 0 : index
    %c0_6 = arith.constant 0 : index
    %5 = vector.load %arg1[%c0_4, %c0_5, %c0_6] : memref<1x8x24xf32, #tpu.memory_space<vmem>>, vector<1x8x24xf32>
    %6 = vector.shape_cast %5 : vector<1x8x24xf32> to vector<8x24xf32>
    %c0_7 = arith.constant 0 : index
    %c0_8 = arith.constant 0 : index
    %c0_9 = arith.constant 0 : index
    %7 = vector.load %arg2[%c0_7, %c0_8, %c0_9] : memref<1x8x1xf32, #tpu.memory_space<vmem>>, vector<1x8x1xf32>
    %8 = vector.shape_cast %7 : vector<1x8x1xf32> to vector<8x1xf32>
    %9 = vector.shape_cast %8 : vector<8x1xf32> to vector<8x1xf32>
    %10 = vector.broadcast %9 : vector<8x1xf32> to vector<8x32xf32>
    %c0_10 = arith.constant 0 : index
    %c0_11 = arith.constant 0 : index
    %c0_12 = arith.constant 0 : index
    %11 = vector.load %arg16[%c0_10, %c0_11, %c0_12] : memref<2x8x32xf32, #tpu.memory_space<vmem>>, vector<1x8x32xf32>
    %12 = vector.shape_cast %11 : vector<1x8x32xf32> to vector<8x32xf32>
    %13 = arith.mulf %12, %10 : vector<8x32xf32>
    %14 = arith.truncf %6 : vector<8x24xf32> to vector<8x24xbf16>
    %c0_13 = arith.constant 0 : index
    %c0_14 = arith.constant 0 : index
    %15 = vector.load %arg4[%c0_13, %c0_14] : memref<24x96xbf16, #tpu.memory_space<vmem>>, vector<24x96xbf16>
    %cst = arith.constant dense<0.000000e+00> : vector<8x96xf32>
    %16 = tpu.matmul %14, %15, %cst {dimension_numbers = #tpu.dot_dimension_numbers<[1], [0], [0], [1], [0, 0, 1, 1], [], []>} : vector<8x24xbf16>, vector<24x96xbf16>, vector<8x96xf32> -> vector<8x96xf32>
    %c0_15 = arith.constant 0 : index
    %c0_16 = arith.constant 0 : index
    %17 = vector.load %arg6[%c0_15, %c0_16] : memref<1x96xf32, #tpu.memory_space<vmem>>, vector<1x96xf32>
    %18 = vector.broadcast %17 : vector<1x96xf32> to vector<8x96xf32>
    %19 = arith.addf %16, %18 : vector<8x96xf32>
    %20 = arith.truncf %13 : vector<8x32xf32> to vector<8x32xbf16>
    %c0_17 = arith.constant 0 : index
    %c0_18 = arith.constant 0 : index
    %21 = vector.load %arg5[%c0_17, %c0_18] : memref<32x96xbf16, #tpu.memory_space<vmem>>, vector<32x96xbf16>
    %cst_19 = arith.constant dense<0.000000e+00> : vector<8x96xf32>
    %22 = tpu.matmul %20, %21, %cst_19 {dimension_numbers = #tpu.dot_dimension_numbers<[1], [0], [0], [1], [0, 0, 1, 1], [], []>} : vector<8x32xbf16>, vector<32x96xbf16>, vector<8x96xf32> -> vector<8x96xf32>
    %23 = vector.extract_strided_slice %19 {offsets = [0, 0], sizes = [8, 32], strides = [1, 1]} : vector<8x96xf32> to vector<8x32xf32>
    %24 = vector.extract_strided_slice %22 {offsets = [0, 0], sizes = [8, 32], strides = [1, 1]} : vector<8x96xf32> to vector<8x32xf32>
    %25 = arith.addf %23, %24 : vector<8x32xf32>
    %26 = arith.negf %25 : vector<8x32xf32>
    %27 = math.exp %26 : vector<8x32xf32>
    %cst_20 = arith.constant 1.000000e+00 : f32
    %28 = vector.broadcast %cst_20 : f32 to vector<8x32xf32>
    %29 = arith.addf %28, %27 : vector<8x32xf32>
    %30 = arith.divf %28, %29 : vector<8x32xf32>
    %31 = vector.extract_strided_slice %19 {offsets = [0, 32], sizes = [8, 32], strides = [1, 1]} : vector<8x96xf32> to vector<8x32xf32>
    %32 = vector.extract_strided_slice %22 {offsets = [0, 32], sizes = [8, 32], strides = [1, 1]} : vector<8x96xf32> to vector<8x32xf32>
    %33 = arith.addf %31, %32 : vector<8x32xf32>
    %34 = arith.negf %33 : vector<8x32xf32>
    %35 = math.exp %34 : vector<8x32xf32>
    %cst_21 = arith.constant 1.000000e+00 : f32
    %36 = vector.broadcast %cst_21 : f32 to vector<8x32xf32>
    %37 = arith.addf %36, %35 : vector<8x32xf32>
    %38 = arith.divf %36, %37 : vector<8x32xf32>
    %39 = vector.extract_strided_slice %19 {offsets = [0, 64], sizes = [8, 32], strides = [1, 1]} : vector<8x96xf32> to vector<8x32xf32>
    %40 = vector.extract_strided_slice %22 {offsets = [0, 64], sizes = [8, 32], strides = [1, 1]} : vector<8x96xf32> to vector<8x32xf32>
    %c0_22 = arith.constant 0 : index
    %c0_23 = arith.constant 0 : index
    %41 = vector.load %arg7[%c0_22, %c0_23] : memref<1x32xf32, #tpu.memory_space<vmem>>, vector<1x32xf32>
    %42 = vector.broadcast %41 : vector<1x32xf32> to vector<8x32xf32>
    %43 = arith.addf %40, %42 : vector<8x32xf32>
    %44 = arith.mulf %30, %43 : vector<8x32xf32>
    %45 = arith.addf %39, %44 : vector<8x32xf32>
    %46 = math.tanh %45 : vector<8x32xf32>
    %cst_24 = arith.constant 1.000000e+00 : f32
    %47 = vector.broadcast %cst_24 : f32 to vector<8x32xf32>
    %48 = arith.subf %47, %38 : vector<8x32xf32>
    %49 = arith.mulf %48, %46 : vector<8x32xf32>
    %50 = arith.mulf %38, %13 : vector<8x32xf32>
    %51 = arith.addf %49, %50 : vector<8x32xf32>
    %c1 = arith.constant 1 : index
    %c0_25 = arith.constant 0 : index
    %c0_26 = arith.constant 0 : index
    %52 = vector.load %arg16[%c1, %c0_25, %c0_26] : memref<2x8x32xf32, #tpu.memory_space<vmem>>, vector<1x8x32xf32>
    %53 = vector.shape_cast %52 : vector<1x8x32xf32> to vector<8x32xf32>
    %54 = arith.mulf %53, %10 : vector<8x32xf32>
    %55 = arith.truncf %51 : vector<8x32xf32> to vector<8x32xbf16>
    %c0_27 = arith.constant 0 : index
    %c0_28 = arith.constant 0 : index
    %56 = vector.load %arg8[%c0_27, %c0_28] : memref<32x96xbf16, #tpu.memory_space<vmem>>, vector<32x96xbf16>
    %cst_29 = arith.constant dense<0.000000e+00> : vector<8x96xf32>
    %57 = tpu.matmul %55, %56, %cst_29 {dimension_numbers = #tpu.dot_dimension_numbers<[1], [0], [0], [1], [0, 0, 1, 1], [], []>} : vector<8x32xbf16>, vector<32x96xbf16>, vector<8x96xf32> -> vector<8x96xf32>
    %c0_30 = arith.constant 0 : index
    %c0_31 = arith.constant 0 : index
    %58 = vector.load %arg10[%c0_30, %c0_31] : memref<1x96xf32, #tpu.memory_space<vmem>>, vector<1x96xf32>
    %59 = vector.broadcast %58 : vector<1x96xf32> to vector<8x96xf32>
    %60 = arith.addf %57, %59 : vector<8x96xf32>
    %61 = arith.truncf %54 : vector<8x32xf32> to vector<8x32xbf16>
    %c0_32 = arith.constant 0 : index
    %c0_33 = arith.constant 0 : index
    %62 = vector.load %arg9[%c0_32, %c0_33] : memref<32x96xbf16, #tpu.memory_space<vmem>>, vector<32x96xbf16>
    %cst_34 = arith.constant dense<0.000000e+00> : vector<8x96xf32>
    %63 = tpu.matmul %61, %62, %cst_34 {dimension_numbers = #tpu.dot_dimension_numbers<[1], [0], [0], [1], [0, 0, 1, 1], [], []>} : vector<8x32xbf16>, vector<32x96xbf16>, vector<8x96xf32> -> vector<8x96xf32>
    %64 = vector.extract_strided_slice %60 {offsets = [0, 0], sizes = [8, 32], strides = [1, 1]} : vector<8x96xf32> to vector<8x32xf32>
    %65 = vector.extract_strided_slice %63 {offsets = [0, 0], sizes = [8, 32], strides = [1, 1]} : vector<8x96xf32> to vector<8x32xf32>
    %66 = arith.addf %64, %65 : vector<8x32xf32>
    %67 = arith.negf %66 : vector<8x32xf32>
    %68 = math.exp %67 : vector<8x32xf32>
    %cst_35 = arith.constant 1.000000e+00 : f32
    %69 = vector.broadcast %cst_35 : f32 to vector<8x32xf32>
    %70 = arith.addf %69, %68 : vector<8x32xf32>
    %71 = arith.divf %69, %70 : vector<8x32xf32>
    %72 = vector.extract_strided_slice %60 {offsets = [0, 32], sizes = [8, 32], strides = [1, 1]} : vector<8x96xf32> to vector<8x32xf32>
    %73 = vector.extract_strided_slice %63 {offsets = [0, 32], sizes = [8, 32], strides = [1, 1]} : vector<8x96xf32> to vector<8x32xf32>
    %74 = arith.addf %72, %73 : vector<8x32xf32>
    %75 = arith.negf %74 : vector<8x32xf32>
    %76 = math.exp %75 : vector<8x32xf32>
    %cst_36 = arith.constant 1.000000e+00 : f32
    %77 = vector.broadcast %cst_36 : f32 to vector<8x32xf32>
    %78 = arith.addf %77, %76 : vector<8x32xf32>
    %79 = arith.divf %77, %78 : vector<8x32xf32>
    %80 = vector.extract_strided_slice %60 {offsets = [0, 64], sizes = [8, 32], strides = [1, 1]} : vector<8x96xf32> to vector<8x32xf32>
    %81 = vector.extract_strided_slice %63 {offsets = [0, 64], sizes = [8, 32], strides = [1, 1]} : vector<8x96xf32> to vector<8x32xf32>
    %c0_37 = arith.constant 0 : index
    %c0_38 = arith.constant 0 : index
    %82 = vector.load %arg11[%c0_37, %c0_38] : memref<1x32xf32, #tpu.memory_space<vmem>>, vector<1x32xf32>
    %83 = vector.broadcast %82 : vector<1x32xf32> to vector<8x32xf32>
    %84 = arith.addf %81, %83 : vector<8x32xf32>
    %85 = arith.mulf %71, %84 : vector<8x32xf32>
    %86 = arith.addf %80, %85 : vector<8x32xf32>
    %87 = math.tanh %86 : vector<8x32xf32>
    %cst_39 = arith.constant 1.000000e+00 : f32
    %88 = vector.broadcast %cst_39 : f32 to vector<8x32xf32>
    %89 = arith.subf %88, %79 : vector<8x32xf32>
    %90 = arith.mulf %89, %87 : vector<8x32xf32>
    %91 = arith.mulf %79, %54 : vector<8x32xf32>
    %92 = arith.addf %90, %91 : vector<8x32xf32>
    %cst_40 = arith.constant dense<0.000000e+00> : vector<8xf32>
    %93 = vector.multi_reduction <add>, %92, %cst_40 [1] : vector<8x32xf32> to vector<8xf32>
    %94 = vector.shape_cast %93 : vector<8xf32> to vector<8x1xf32>
    %cst_41 = arith.constant 3.200000e+01 : f32
    %95 = vector.broadcast %cst_41 : f32 to vector<8x1xf32>
    %96 = arith.divf %94, %95 : vector<8x1xf32>
    %97 = vector.broadcast %96 : vector<8x1xf32> to vector<8x32xf32>
    %98 = arith.subf %92, %97 : vector<8x32xf32>
    %99 = arith.mulf %98, %98 : vector<8x32xf32>
    %cst_42 = arith.constant dense<0.000000e+00> : vector<8xf32>
    %100 = vector.multi_reduction <add>, %99, %cst_42 [1] : vector<8x32xf32> to vector<8xf32>
    %101 = vector.shape_cast %100 : vector<8xf32> to vector<8x1xf32>
    %cst_43 = arith.constant 3.200000e+01 : f32
    %102 = vector.broadcast %cst_43 : f32 to vector<8x1xf32>
    %103 = arith.divf %101, %102 : vector<8x1xf32>
    %104 = vector.broadcast %96 : vector<8x1xf32> to vector<8x32xf32>
    %105 = arith.subf %92, %104 : vector<8x32xf32>
    %cst_44 = arith.constant 9.99999974E-6 : f32
    %106 = vector.broadcast %cst_44 : f32 to vector<8x1xf32>
    %107 = arith.addf %103, %106 : vector<8x1xf32>
    %108 = math.rsqrt %107 : vector<8x1xf32>
    %109 = vector.broadcast %108 : vector<8x1xf32> to vector<8x32xf32>
    %110 = arith.mulf %105, %109 : vector<8x32xf32>
    %111 = vector.broadcast %3 : vector<1x32xf32> to vector<8x32xf32>
    %112 = arith.mulf %110, %111 : vector<8x32xf32>
    %113 = vector.broadcast %4 : vector<1x32xf32> to vector<8x32xf32>
    %114 = arith.addf %112, %113 : vector<8x32xf32>
    %c0_45 = arith.constant 0 : index
    %c0_46 = arith.constant 0 : index
    %c0_47 = arith.constant 0 : index
    %115 = vector.load %arg14[%c0_45, %c0_46, %c0_47] : memref<1x8x32xf32, #tpu.memory_space<vmem>>, vector<1x8x32xf32>
    %116 = vector.shape_cast %115 : vector<1x8x32xf32> to vector<8x32xf32>
    %117 = vector.shape_cast %114 : vector<8x32xf32> to vector<1x8x32xf32>
    tpu.vector_store %arg14[%c0_45, %c0_46, %c0_47], %117 {strides = array<i32>} : memref<1x8x32xf32, #tpu.memory_space<vmem>>, vector<1x8x32xf32>,
    %c0_48 = arith.constant 0 : index
    %c0_49 = arith.constant 0 : index
    %c0_50 = arith.constant 0 : index
    %118 = vector.load %arg16[%c0_48, %c0_49, %c0_50] : memref<2x8x32xf32, #tpu.memory_space<vmem>>, vector<1x8x32xf32>
    %119 = vector.shape_cast %118 : vector<1x8x32xf32> to vector<8x32xf32>
    %120 = vector.shape_cast %51 : vector<8x32xf32> to vector<1x8x32xf32>
    tpu.vector_store %arg16[%c0_48, %c0_49, %c0_50], %120 {strides = array<i32>} : memref<2x8x32xf32, #tpu.memory_space<vmem>>, vector<1x8x32xf32>,
    %c1_51 = arith.constant 1 : index
    %c0_52 = arith.constant 0 : index
    %c0_53 = arith.constant 0 : index
    %121 = vector.load %arg16[%c1_51, %c0_52, %c0_53] : memref<2x8x32xf32, #tpu.memory_space<vmem>>, vector<1x8x32xf32>
    %122 = vector.shape_cast %121 : vector<1x8x32xf32> to vector<8x32xf32>
    %123 = vector.shape_cast %92 : vector<8x32xf32> to vector<1x8x32xf32>
    tpu.vector_store %arg16[%c1_51, %c0_52, %c0_53], %123 {strides = array<i32>} : memref<2x8x32xf32, #tpu.memory_space<vmem>>, vector<1x8x32xf32>,
    %c0_i32_54 = arith.constant 0 : i32
    %124 = arith.cmpi eq, %arg0, %c0_i32_54 : i32
    %125 = arith.extui %124 : i1 to i32
    %c0_i32_55 = arith.constant 0 : i32
    %126 = arith.cmpi ne, %125, %c0_i32_55 : i32
    scf.if %126 {
      %c0_56 = arith.constant 0 : index
      %c0_57 = arith.constant 0 : index
      %c0_58 = arith.constant 0 : index
      %127 = vector.load %arg16[%c0_56, %c0_57, %c0_58] : memref<2x8x32xf32, #tpu.memory_space<vmem>>, vector<2x8x32xf32>
      %c0_59 = arith.constant 0 : index
      %c0_60 = arith.constant 0 : index
      %c0_61 = arith.constant 0 : index
      %128 = vector.load %arg15[%c0_59, %c0_60, %c0_61] : memref<2x8x32xf32, #tpu.memory_space<vmem>>, vector<2x8x32xf32>
      tpu.vector_store %arg15[%c0_59, %c0_60, %c0_61], %127 {strides = array<i32>} : memref<2x8x32xf32, #tpu.memory_space<vmem>>, vector<2x8x32xf32>,
    } else {
    }
    return
  }
  func.func @transform_0(%arg0: i32) -> (i32, i32, i32) {
    %c0_i32 = arith.constant 0 : i32
    %c0_i32_0 = arith.constant 0 : i32
    %c0_i32_1 = arith.constant 0 : i32
    return %arg0, %c0_i32, %c0_i32_0 : i32, i32, i32
  }
  func.func @transform_1(%arg0: i32) -> (i32, i32, i32) {
    %c0_i32 = arith.constant 0 : i32
    %c0_i32_0 = arith.constant 0 : i32
    %c0_i32_1 = arith.constant 0 : i32
    return %arg0, %c0_i32, %c0_i32_0 : i32, i32, i32
  }
  func.func @transform_2(%arg0: i32) -> (i32, i32, i32) {
    %c0_i32 = arith.constant 0 : i32
    %c0_i32_0 = arith.constant 0 : i32
    %c0_i32_1 = arith.constant 0 : i32
    %c0_i32_2 = arith.constant 0 : i32
    return %c0_i32, %c0_i32_0, %c0_i32_1 : i32, i32, i32
  }
  func.func @transform_3(%arg0: i32) -> (i32, i32) {
    %c0_i32 = arith.constant 0 : i32
    %c0_i32_0 = arith.constant 0 : i32
    %c0_i32_1 = arith.constant 0 : i32
    return %c0_i32, %c0_i32_0 : i32, i32
  }
  func.func @transform_4(%arg0: i32) -> (i32, i32) {
    %c0_i32 = arith.constant 0 : i32
    %c0_i32_0 = arith.constant 0 : i32
    %c0_i32_1 = arith.constant 0 : i32
    return %c0_i32, %c0_i32_0 : i32, i32
  }
  func.func @transform_5(%arg0: i32) -> (i32, i32) {
    %c0_i32 = arith.constant 0 : i32
    %c0_i32_0 = arith.constant 0 : i32
    %c0_i32_1 = arith.constant 0 : i32
    return %c0_i32, %c0_i32_0 : i32, i32
  }
  func.func @transform_6(%arg0: i32) -> (i32, i32) {
    %c0_i32 = arith.constant 0 : i32
    %c0_i32_0 = arith.constant 0 : i32
    %c0_i32_1 = arith.constant 0 : i32
    return %c0_i32, %c0_i32_0 : i32, i32
  }
  func.func @transform_7(%arg0: i32) -> (i32, i32) {
    %c0_i32 = arith.constant 0 : i32
    %c0_i32_0 = arith.constant 0 : i32
    %c0_i32_1 = arith.constant 0 : i32
    return %c0_i32, %c0_i32_0 : i32, i32
  }
  func.func @transform_8(%arg0: i32) -> (i32, i32) {
    %c0_i32 = arith.constant 0 : i32
    %c0_i32_0 = arith.constant 0 : i32
    %c0_i32_1 = arith.constant 0 : i32
    return %c0_i32, %c0_i32_0 : i32, i32
  }
  func.func @transform_9(%arg0: i32) -> (i32, i32) {
    %c0_i32 = arith.constant 0 : i32
    %c0_i32_0 = arith.constant 0 : i32
    %c0_i32_1 = arith.constant 0 : i32
    return %c0_i32, %c0_i32_0 : i32, i32
  }
  func.func @transform_10(%arg0: i32) -> (i32, i32) {
    %c0_i32 = arith.constant 0 : i32
    %c0_i32_0 = arith.constant 0 : i32
    %c0_i32_1 = arith.constant 0 : i32
    return %c0_i32, %c0_i32_0 : i32, i32
  }
  func.func @transform_11(%arg0: i32) -> (i32, i32) {
    %c0_i32 = arith.constant 0 : i32
    %c0_i32_0 = arith.constant 0 : i32
    %c0_i32_1 = arith.constant 0 : i32
    return %c0_i32, %c0_i32_0 : i32, i32
  }
  func.func @transform_12(%arg0: i32) -> (i32, i32) {
    %c0_i32 = arith.constant 0 : i32
    %c0_i32_0 = arith.constant 0 : i32
    %c0_i32_1 = arith.constant 0 : i32
    return %c0_i32, %c0_i32_0 : i32, i32
  }
  func.func @transform_13(%arg0: i32) -> (i32, i32, i32) {
    %c0_i32 = arith.constant 0 : i32
    %c0_i32_0 = arith.constant 0 : i32
    %c0_i32_1 = arith.constant 0 : i32
    return %arg0, %c0_i32, %c0_i32_0 : i32, i32, i32
  }
  func.func @transform_14(%arg0: i32) -> (i32, i32, i32) {
    %c0_i32 = arith.constant 0 : i32
    %c0_i32_0 = arith.constant 0 : i32
    %c0_i32_1 = arith.constant 0 : i32
    %c0_i32_2 = arith.constant 0 : i32
    return %c0_i32, %c0_i32_0, %c0_i32_1 : i32, i32, i32
  }
}

</mosaic_0001>

<bundles_post_ra>
// kernel: tpu_custom_call.1
= control target key start
LH: loop header
LB: loop body
LE: loop exit
PB: predicated region body
PF: predicated region fallthrough
CT: control target
= control target key end

     0   :  { %20 = vsyncpa [#allocation4], 0  ;;  %s1023_s0 = inlined_call_operand.hbm [shape: f32[1,8,24], index: 0, kind: input, shape index: {}]   ;;  %s1024_s1 = inlined_call_operand.vmem [shape: f32[1,8,1], index: 1, kind: input, shape index: {}]   ;;  %s1025_s2 = inlined_call_operand.hbm [shape: f32[2,8,32], index: 2, kind: input, shape index: {}]   ;;  %s1026_s3 = inlined_call_operand.hbm [shape: bf16[24,96], index: 3, kind: input, shape index: {}]   ;;  %s1027_s4 = inlined_call_operand.hbm [shape: bf16[32,96], index: 4, kind: input, shape index: {}]   ;;  %s1028_s5 = inlined_call_operand.hbm [shape: f32[1,96], index: 5, kind: input, shape index: {}]   ;;  %s1029_s6 = inlined_call_operand.hbm [shape: f32[1,32], index: 6, kind: input, shape index: {}]   ;;  %s1030_s7 = inlined_call_operand.hbm [shape: bf16[32,96], index: 7, kind: input, shape index: {}]   ;;  %s1031_s8 = inlined_call_operand.vmem [shape: bf16[32,96], index: 8, kind: input, shape index: {}]   ;;  %s1032_s9 = inlined_call_operand.vmem [shape: f32[1,96], index: 9, kind: input, shape index: {}]   ;;  %s1033_s10 = inlined_call_operand.vmem [shape: f32[1,32], index: 10, kind: input, shape index: {}]   ;;  %s1034_s11 = inlined_call_operand.vmem [shape: f32[1,32], index: 11, kind: input, shape index: {}]   ;;  %s1035_s12 = inlined_call_operand.vmem [shape: f32[1,32], index: 12, kind: input, shape index: {}]   ;;  %s1036_s13 = inlined_call_operand.hbm [shape: f32[1,8,32], index: 13, kind: output, shape index: {0}]   ;;  %s1037_s14 = inlined_call_operand.hbm [shape: f32[2,8,32], index: 14, kind: output, shape index: {1}]  }
   0x1   :  { %21 = vsyncpa [#allocation7], 0 }
   0x2   :  { %22 = vsyncpa [#allocation10], 0 }
   0x3   :  { %23 = vsyncpa [#allocation13], 0 }
   0x4   :  { %24 = vsyncpa [#allocation5], 0  ;;  %s43_s15 = sshll.u32 %s1025_s2, 4  ;;  %s44_s15 = int_to_ptr.hbm [resolvable:$true] %s43_s15 }
   0x5   :  { %25 = vsyncpa [#allocation17], 0  ;;  %s834_s16 = smov [#allocation6]   ;;  %s835_s18 = smov 128  }
   0x6   :  { %s45_s17 = sshll.u32 %s834_s16, 4  ;;  %s836_s19 = smov 8   ;;  %s46_s17 = int_to_ptr.vmem [resolvable:$true] %s45_s17 }
   0x7   :  { %51 = dma.hbm_to_vmem [thread:$0]  %s44_s15, 256, %s46_s17, [#allocation7], %s835_s18, %s835_s18, %s836_s19  }
   0x8   :  { %s69_s22 = sshll.u32 %s1027_s4, 4  ;;  %s837_s23 = smov [#allocation9]   ;;  %s70_s22 = int_to_ptr.hbm [resolvable:$true] %s69_s22 }
   0x9   :  { %s71_s24 = sshll.u32 %s837_s23, 4  ;;  %s94_s26 = sshll.u32 %s1029_s6, 4  ;;  %s72_s24 = int_to_ptr.vmem [resolvable:$true] %s71_s24  ;;  %s95_s26 = int_to_ptr.hbm [resolvable:$true] %s94_s26 }
   0xa   :  { %s838_s27 = smov 64   ;;  %s839_s28 = smov 4  }
   0xb   :  { %77 = dma.hbm_to_vmem [thread:$0]  %s70_s22, 256, %s72_s24, [#allocation10], %s838_s27, %s838_s27, %s839_s28  }
   0xc   :  { %s31_s15 = sshll.u32 %s1023_s0, 4  ;;  %s840_s4 = smov [#allocation12]   ;;  %s32_s15 = int_to_ptr.hbm [resolvable:$true] %s31_s15 }
   0xd   :  { %s96_s16 = sshll.u32 %s840_s4, 4  ;;  %s841_s17 = smov [#allocation3]   ;;  %s97_s16 = int_to_ptr.vmem [resolvable:$true] %s96_s16 }
   0xe   :  { %99 = dma.hbm_to_vmem [thread:$0]  %s95_s26, 16, %s97_s16, [#allocation13]  }
   0xf   :  { %s33_s20 = sshll.u32 %s841_s17, 4  ;;  %s56_s23 = sshll.u32 %s1026_s3, 4  ;;  %s34_s20 = int_to_ptr.vmem [resolvable:$true] %s33_s20  ;;  %s57_s23 = int_to_ptr.hbm [resolvable:$true] %s56_s23 }
  0x10   :  { %36 = dma.hbm_to_vmem [thread:$0]  %s32_s15, 128, %s34_s20, [#allocation4]  }
  0x11   :  { %s83_s24 = sshll.u32 %s1028_s5, 4  ;;  %s842_s2 = smov [#allocation8]   ;;  %s84_s24 = int_to_ptr.hbm [resolvable:$true] %s83_s24 }
  0x12   :  { %s58_s0 = sshll.u32 %s842_s2, 4  ;;  %s843_s26 = smov [#allocation11]   ;;  %s59_s0 = int_to_ptr.vmem [resolvable:$true] %s58_s0 }
  0x13   :  { %64 = dma.hbm_to_vmem [thread:$0]  %s57_s23, 192, %s59_s0, [#allocation7], %s838_s27, %s838_s27, %s839_s28  }
  0x14   :  { %s85_s29 = sshll.u32 %s843_s26, 4  ;;  %s104_s3 = sshll.u32 %s1030_s7, 4  ;;  %s86_s29 = int_to_ptr.vmem [resolvable:$true] %s85_s29  ;;  %s105_s3 = int_to_ptr.hbm [resolvable:$true] %s104_s3 }
  0x15   :  { %88 = dma.hbm_to_vmem [thread:$0]  %s84_s24, 16, %s86_s29, [#allocation10]  }
  0x16   :  { %s844_s15 = smov [#allocation14]  }
  0x17   :  { %s106_s16 = sshll.u32 %s844_s15, 4  ;;  %s107_s16 = int_to_ptr.vmem [resolvable:$true] %s106_s16 }
  0x18   :  { %112 = dma.hbm_to_vmem [thread:$0]  %s105_s3, 256, %s107_s16, [#allocation13], %s838_s27, %s838_s27, %s839_s28  }
  0x19   :  { %822 = dma.done.wait [#allocation4], 128  }
  0x1a   :  { %823 = vsyncadd [#allocation4], 4294967168 }
  0x1b   :  { %824 = dma.done.wait [#allocation7], 448  }
  0x1c   :  { %825 = vsyncadd [#allocation7], 4294966848 }
  0x1d   :  { %826 = dma.done.wait [#allocation10], 272  }
  0x1e   :  { %827 = vsyncadd [#allocation10], 4294967024 }
  0x1f   :  { %828 = dma.done.wait [#allocation13], 272  }
  0x20   :  { %829 = vsyncadd [#allocation13], 4294967024  ;;  %v845_v0 = vmov 0   ;;  %v164_v1 = vld [vmem:[%s1024_s1] sm:$0xff]  ;;  %v175_v2 = vld [vmem:[#allocation8 + $0x8] sm:$0xf] }
  0x21   :  { %583 = vset.pattern.permute.xlu0 %v845_v0  ;;  %v561_v3 = vld [vmem:[#allocation9 + $0x8] sm:$0xff]  ;;  %v185_v4 = vunpack.c.l.b16 %v175_v2  ;;  %vm193_vm0 = vcmask 1043456   ;;  %v565_v5 = vld [vmem:[%s1031_s8 + $0x8] sm:$0xff]  ;;  %vm158_vm1 = vcmask 261120   ;;  %v560_v11 = vld [vmem:[#allocation9] sm:$0xff]  ;;  %vm189_vm2 = vcmask 195584  }
  0x22   :  { %167 = vperm.xlu0 %583, %v164_v1   ;;  %237 = vmatpush.bf16.msra.mxu1 %v561_v3  ;;  %v559_v8 = vld [vmem:[#allocation8] sm:$0xff]  ;;  %v156_v9 = vld [vmem:[#allocation6] sm:$0xff]  ;;  %v157_v10 = vld [vmem:[#allocation6 + $0x8] sm:$0xff]  ;;  %s846_s21 = smov 96   ;;  %s847_s23 = smov 32  }
  0x23   :  { %v187_v6 = vpack.c.b16 %v185_v4, %v185_v4  ;;  %363 = vmatpush.bf16.msra.mxu3 %v565_v5  ;;  %159 = vst.msk [vmem:[#allocation2] sm:$0xff] %vm158_vm1, %v156_v9  ;;  %v564_v12 = vld [vmem:[%s1031_s8] sm:$0xff]  ;;  %v163_v13 = vld [vmem:[#allocation3] sm:$0xff]  ;;  %v562_v56 = vld [vmem:[#allocation14] sm:$0xff]  ;;  %s504_s26 = sshll.u32 %s1037_s14, 4  ;;  %s850_s14 = smov [#allocation15]   ;;  %s505_s26 = int_to_ptr.hbm [resolvable:$true] %s504_s26 }
  0x24   :  { %160 = vst.msk [vmem:[#allocation2 + $0x8] sm:$0xff] %vm158_vm1, %v157_v10  ;;  %v172_v14 = vpack.c.bf16 %v163_v13, %v163_v13  ;;  %v584_v15 = vld [vmem:[#allocation12] ss:$0 sm:$0xff]  ;;  %v585_v31 = vld [vmem:[#allocation11] ss:$0 sm:$0xff]  ;;  %v563_v55 = vld [vmem:[#allocation14 + $0x8] sm:$0xff] }
  0x25   :  { %v195_v7 = vsel %vm193_vm0, %v187_v6, 0  ;;  %v586_v49 = vld [vmem:[%s1033_s10] ss:$0 sm:$0xff]  ;;  %330 = vmatpush.bf16.msra.mxu2 %v563_v55  ;;  %s494_s30 = sshll.u32 %s1036_s13, 4  ;;  %s495_s30 = int_to_ptr.hbm [resolvable:$true] %s494_s30 }
  0x26   :  { %203 = vmatpush.bf16.msra.mxu0 %v195_v7  ;;  %238 = vmatpush.bf16.msra.mxu1 %v560_v11  ;;  %v587_v1 = vld [vmem:[%s1032_s9] ss:$0 sm:$0xff] }
  0x27   :  { %364 = vmatpush.bf16.msra.mxu3 %v564_v12 }
  0x29   :  { %331 = vmatpush.bf16.msra.mxu2 %v562_v56 }
  0x2a   :  { %204 = vmatpush.bf16.msra.mxu0 %v559_v8  ;;  %267 = vrot.lane.b32.xlu0 %v584_v15, %s838_s27  ;;  %v170_v16 = vld [vmem:[#allocation2] sm:$0xff] }
  0x2b   :  { %v295_v17 = vld [vmem:[#allocation2 + $0x8] sm:$0xff] }
  0x2d   :  { %529 = vmatmul.msk.bf16.vlgmr.msra.gmra.mxu0 %vm189_vm2, %v172_v14 }
  0x94   :  { %v168_v18 = vpop.permute.xlu0 %167 }
  0x95   :  { %v171_v19 = vmul.f32 %v170_v16, %v168_v18  ;;  %v296_v20 = vmul.f32 %v295_v17, %v168_v18 }
  0x97   :  { %v210_v21 = vpack.c.bf16 %v171_v19, %v171_v19  ;;  %v337_v22 = vpack.c.bf16 %v296_v20, %v296_v20 }
  0x99   :  { %538 = vmatmul.msk.bf16.vlgmr.msra.gmra.mxu1 %vm158_vm1, %v210_v21  ;;  %557 = vmatmul.msk.bf16.vlgmr.msra.gmra.mxu3 %vm158_vm1, %v337_v22 }
  0x9c   :  { %v268_v25 = vpop.permute.xlu0 %267 }
  0xaa   :  { %v206_v23 = vpop.f32.mrf.mxu0 }
  0xab   :  { %v207_v32 = vadd.f32 %v585_v31, %v206_v23 }
  0xb2   :  { %v208_v24 = vpop.f32.mrf.mxu0 }
 0x116   :  { %v240_v26 = vpop.f32.mrf.mxu1 }
 0x117   :  { %v270_v27 = vadd.f32 %v268_v25, %v240_v26  ;;  %v244_v33 = vadd.f32 %v240_v26, %v207_v32 }
 0x119   :  { %272 = vrot.lane.b32.xlu1 %v270_v27, %s838_s27  ;;  %v539_v34 = vmul.f32 -1.442695, %v244_v33  ;;  %v848_v33 = vmov 32.0  }
 0x11b   :  { %590 = vpow2.f32 %v539_v34 }
 0x11c   :  { %v366_v28 = vpop.f32.mrf.mxu3 }
 0x11e   :  { %v242_v29 = vpop.f32.mrf.mxu1 }
 0x121   :  { %v591_v35 = vpop.eup %590 }
 0x122   :  { %v248_v36 = vadd.f32 1.0, %v591_v35 }
 0x124   :  { %v368_v30 = vpop.f32.mrf.mxu3  ;;  %592 = vrcp.f32 %v248_v36  ;;  %v260_v42 = vand.u32 2147483648, %v248_v36  ;;  %vm254_vm4 = vweird.f32 %v248_v36  ;;  %v258_v43 = vand.u32 2147483647, %v248_v36 }
 0x126   :  { %v261_v45 = vor.u32 1.1754944e-38, %v260_v42  ;;  %vm259_vm6 = vcmp.eq.f32.partialorder %v258_v43, 8.507059e+37 }
 0x12a   :  { %v593_v37 = vpop.eup %592 }
 0x12b   :  { %v250_v38 = vmul.f32 %v593_v37, %v248_v36  ;;  %vm255_vm3 = vweird.f32 %v593_v37 }
 0x12c   :  { %vm256_vm5 = vmor %vm254_vm4, %vm255_vm3 }
 0x12d   :  { %v251_v39 = vsub.f32 1.0, %v250_v38 }
 0x12f   :  { %v252_v40 = vmul.f32 %v593_v37, %v251_v39 }
 0x131   :  { %v253_v41 = vadd.f32 %v593_v37, %v252_v40 }
 0x133   :  { %v257_v44 = vsel %vm256_vm5, %v593_v37, %v253_v41 }
 0x134   :  { %v262_v47 = vsel %vm259_vm6, %v261_v45, %v257_v44  ;;  %v588_v44 = vld [vmem:[%s1034_s11] ss:$0 sm:$0xff]  ;;  %s849_s11 = smov [#allocation16]  }
 0x135   :  { %v282_v58 = vsub.f32 1.0, %v262_v47  ;;  %v589_v45 = vld [vmem:[%s1035_s12] ss:$0 sm:$0xff]  ;;  %s502_s2 = sshll.u32 %s849_s11, 4  ;;  %s503_s2 = int_to_ptr.vmem [resolvable:$true] %s502_s2 }
 0x18b   :  { %v273_v46 = vpop.permute.xlu1 %272 }
 0x18c   :  { %v275_v48 = vmul.f32 %v273_v46, %v262_v47 }
 0x18e   :  { %277 = vrot.lane.b32.xlu1 %v275_v48, %s838_s27 }
 0x196   :  { %393 = vrot.lane.b32.xlu1 %v586_v49, %s838_s27 }
 0x200   :  { %v278_v50 = vpop.permute.xlu1 %277 }
 0x201   :  { %v280_v51 = vadd.f32 %v278_v50, %v207_v32 }
 0x203   :  { %594 = vtanh.f32 %v280_v51 }
 0x208   :  { %v394_v53 = vpop.permute.xlu1 %393 }
 0x209   :  { %v595_v52 = vpop.eup %594  ;;  %v396_v54 = vadd.f32 %v394_v53, %v366_v28 }
 0x20a   :  { %284 = vrot.lane.b32.xlu2 %v595_v52, %s846_s21 }
 0x212   :  { %289 = vrot.lane.b32.xlu2 %v171_v19, %s847_s23 }
 0x21a   :  { %398 = vrot.lane.b32.xlu2 %v396_v54, %s838_s27 }
 0x222   :  { %415 = vrot.lane.b32.xlu2 %v296_v20, %s847_s23 }
 0x264   :  { %v285_v57 = vpop.permute.xlu2 %284 }
 0x265   :  { %v287_v60 = vmul.f32 %v285_v57, %v282_v58 }
 0x26c   :  { %v290_v59 = vpop.permute.xlu2 %289 }
 0x26d   :  { %v292_v61 = vmul.f32 %v290_v59, %v262_v47 }
 0x26f   :  { %v983_v62 = vadd.f32 %v292_v61, %v287_v60 }
 0x271   :  { %v297_v63 = vpack.c.bf16 %v983_v62, %v983_v62 }
 0x273   :  { %307 = vrot.lane.b32.xlu0 %v297_v63, %s846_s21 }
 0x274   :  { %v399_v18 = vpop.permute.xlu2 %398 }
 0x27c   :  { %v416_v25 = vpop.permute.xlu2 %415 }
 0x2e5   :  { %v308_v0 = vpop.permute.xlu0 %307 }
 0x2e6   :  { %548 = vmatmul.msk.bf16.vlgmr.msra.gmra.mxu2 %vm158_vm1, %v308_v0 }
 0x369   :  { %v333_v2 = vpop.f32.mrf.mxu2 }
 0x36a   :  { %v334_v3 = vadd.f32 %v587_v1, %v333_v2 }
 0x36c   :  { %v370_v4 = vadd.f32 %v366_v28, %v334_v3 }
 0x36e   :  { %v558_v5 = vmul.f32 -1.442695, %v370_v4 }
 0x370   :  { %596 = vpow2.f32 %v558_v5 }
 0x371   :  { %v335_v6 = vpop.f32.mrf.mxu2 }
 0x376   :  { %v597_v7 = vpop.eup %596 }
 0x377   :  { %v374_v8 = vadd.f32 1.0, %v597_v7 }
 0x379   :  { %598 = vrcp.f32 %v374_v8  ;;  %v386_v12 = vand.u32 2147483648, %v374_v8  ;;  %v384_v14 = vand.u32 2147483647, %v374_v8  ;;  %vm380_vm8 = vweird.f32 %v374_v8 }
 0x37b   :  { %v387_v16 = vor.u32 1.1754944e-38, %v386_v12  ;;  %vm385_vm10 = vcmp.eq.f32.partialorder %v384_v14, 8.507059e+37 }
 0x37f   :  { %v599_v9 = vpop.eup %598 }
 0x380   :  { %v376_v10 = vmul.f32 %v599_v9, %v374_v8  ;;  %vm381_vm7 = vweird.f32 %v599_v9 }
 0x381   :  { %vm382_vm9 = vmor %vm380_vm8, %vm381_vm7 }
 0x382   :  { %v377_v11 = vsub.f32 1.0, %v376_v10 }
 0x384   :  { %v378_v13 = vmul.f32 %v599_v9, %v377_v11 }
 0x386   :  { %v379_v15 = vadd.f32 %v599_v9, %v378_v13 }
 0x388   :  { %v383_v17 = vsel %vm382_vm9, %v599_v9, %v379_v15 }
 0x389   :  { %v388_v19 = vsel %vm385_vm10, %v387_v16, %v383_v17 }
 0x38a   :  { %v401_v20 = vmul.f32 %v399_v18, %v388_v19  ;;  %v408_v24 = vsub.f32 1.0, %v388_v19  ;;  %v418_v28 = vmul.f32 %v416_v25, %v388_v19 }
 0x38c   :  { %403 = vrot.lane.b32.xlu0 %v401_v20, %s838_s27 }
 0x3fe   :  { %v404_v21 = vpop.permute.xlu0 %403 }
 0x3ff   :  { %v406_v22 = vadd.f32 %v404_v21, %v334_v3 }
 0x401   :  { %600 = vtanh.f32 %v406_v22 }
 0x402   :  { %602 = vrcp.f32 %v848_v33 }
 0x407   :  { %v601_v23 = vpop.eup %600 }
 0x408   :  { %410 = vrot.lane.b32.xlu1 %v601_v23, %s846_s21  ;;  %v603_v34 = vpop.eup %602 }
 0x409   :  { %v428_v35 = vmul.f32 32.0, %v603_v34  ;;  %vm432_vm11 = vweird.f32 %v603_v34 }
 0x40b   :  { %v429_v36 = vsub.f32 1.0, %v428_v35 }
 0x40d   :  { %v430_v37 = vmul.f32 %v603_v34, %v429_v36 }
 0x40f   :  { %v431_v38 = vadd.f32 %v603_v34, %v430_v37 }
 0x411   :  { %v433_v39 = vsel %vm432_vm11, %v603_v34, %v431_v38 }
 0x47a   :  { %v411_v26 = vpop.permute.xlu1 %410 }
 0x47b   :  { %v413_v27 = vmul.f32 %v411_v26, %v408_v24 }
 0x47d   :  { %v419_v29 = vadd.f32 %v418_v28, %v413_v27 }
 0x47f   :  { %421 = vrot.lane.b32.xlu0 %v419_v29, %s846_s21 }
 0x4f1   :  { %v422_v30 = vpop.permute.xlu0 %421 }
 0x4f2   :  { %479 = vst.msk [vmem:[#allocation2 + $0x8] sm:$0xff] %vm158_vm1, %v422_v30  ;;  %v424_v31 = vsel %vm158_vm1, %v422_v30, 0.0 }
 0x4f3   :  { %425 = vadd.xlane.f32.xlu1 %v424_v31 }
 0x4f9   :  { %v484_v32 = vld [vmem:[#allocation2 + $0x8] sm:$0xff] }
 0x4fa   :  { %486 = vst.msk [vmem:[#allocation16 + $0x8] sm:$0xff] %vm158_vm1, %v484_v32 }
 0x566   :  { %v426_v40 = vpop.xlane.xlu1 %425 }
 0x567   :  { %v434_v41 = vmul.f32 %v433_v39, %v426_v40 }
 0x569   :  { %v435_v42 = vsub.f32 %v419_v29, %v434_v41 }
 0x56b   :  { %v436_v43 = vmul.f32 %v435_v42, %v435_v42 }
 0x56d   :  { %438 = vrot.lane.b32.xlu2 %v436_v43, %s846_s21 }
 0x575   :  { %459 = vrot.lane.b32.xlu2 %v588_v44, %s847_s23 }
 0x57d   :  { %465 = vrot.lane.b32.xlu2 %v589_v45, %s847_s23 }
 0x585   :  { %475 = vrot.lane.b32.xlu2 %v983_v62, %s846_s21 }
 0x5c7   :  { %v439_v46 = vpop.permute.xlu2 %438 }
 0x5c8   :  { %v441_v47 = vsel %vm158_vm1, %v439_v46, 0.0 }
 0x5c9   :  { %442 = vadd.xlane.f32.xlu0 %v441_v47 }
 0x5cf   :  { %v460_v48 = vpop.permute.xlu2 %459 }
 0x5d7   :  { %v466_v49 = vpop.permute.xlu2 %465 }
 0x5df   :  { %v476_v50 = vpop.permute.xlu2 %475 }
 0x5e0   :  { %478 = vst.msk [vmem:[#allocation2] sm:$0xff] %vm158_vm1, %v476_v50 }
 0x5e7   :  { %v483_v51 = vld [vmem:[#allocation2] sm:$0xff] }
 0x5e8   :  { %485 = vst.msk [vmem:[#allocation16] sm:$0xff] %vm158_vm1, %v483_v51 }
 0x5e9   :  { %510 = dma.vmem_to_hbm [thread:$0]  %s503_s2, 256, %s505_s26, [#allocation17], %s835_s18, %s835_s18, %s836_s19  }
 0x5ea   :  { %s492_s18 = sshll.u32 %s850_s14, 4  ;;  %s493_s18 = int_to_ptr.vmem [resolvable:$true] %s492_s18 }
 0x63c   :  { %v443_v52 = vpop.xlane.xlu0 %442 }
 0x63d   :  { %v444_v53 = vmul.f32 %v443_v52, %v433_v39 }
 0x63f   :  { %v445_v54 = vadd.f32 1e-05, %v444_v53 }
 0x641   :  { %604 = vrsqrt.f32 %v445_v54  ;;  %vm452_vm13 = vweird.f32 %v445_v54 }
 0x647   :  { %v605_v55 = vpop.eup %604 }
 0x648   :  { %v447_v56 = vmul.f32 %v605_v55, %v445_v54  ;;  %vm453_vm12 = vweird.f32 %v605_v55 }
 0x649   :  { %vm454_vm14 = vmor %vm452_vm13, %vm453_vm12 }
 0x64a   :  { %v448_v57 = vmul.f32 %v605_v55, %v447_v56 }
 0x64c   :  { %v449_v58 = vmul.f32 0.5, %v448_v57 }
 0x64e   :  { %v450_v59 = vsub.f32 1.5, %v449_v58 }
 0x650   :  { %v451_v60 = vmul.f32 %v605_v55, %v450_v59 }
 0x652   :  { %v455_v61 = vsel %vm454_vm14, %v605_v55, %v451_v60 }
 0x653   :  { %v456_v62 = vmul.f32 %v455_v61, %v435_v42 }
 0x655   :  { %v462_v63 = vmul.f32 %v460_v48, %v456_v62 }
 0x657   :  { %v468_v0 = vadd.f32 %v466_v49, %v462_v63 }
 0x659   :  { %470 = vrot.lane.b32.xlu2 %v468_v0, %s846_s21 }
 0x6b3   :  { %v471_v1 = vpop.permute.xlu2 %470 }
 0x6b4   :  { %473 = vst.msk [vmem:[#allocation15] sm:$0xff] %vm158_vm1, %v471_v1 }
 0x6b5   :  { %497 = dma.vmem_to_hbm [thread:$0]  %s493_s18, 128, %s495_s30, [#allocation5]  }
 0x6b6   :  { %830 = dma.done.wait [#allocation5], 128  }
 0x6b7   :  { %831 = vsyncadd [#allocation5], 4294967168 }
 0x6b8   :  { %832 = dma.done.wait [#allocation17], 256  }
 0x6b9   :  { %833 = vsyncadd [#allocation17], 4294967040 }
 0x6ba   :  { %519 = vsyncpa [#allocation4], 1 }
 0x6bb   :  { %520 = vsyncpa [#allocation7], 1 }
 0x6bc   :  { %521 = vsyncpa [#allocation10], 1 }
 0x6bd   :  { %522 = vsyncpa [#allocation13], 1 }
 0x6be   :  { %523 = vsyncpa [#allocation5], 1 }
 0x6bf   :  { %524 = vsyncpa [#allocation17], 1 }

</bundles_post_ra>
